<compile_context>
chip_gen: v6e
topology: v6e:2x2x1
jax: 0.10.0
libtpu: 0.0.40
codegen_flags: <defaults>
</compile_context>

<pallas_src>
import functools
import math

import jax
import jax.numpy as jnp
import numpy as np
from jax import lax
from jax.experimental import pallas as pl
from jax.experimental.pallas import tpu as pltpu

_TQ = 256  # attention query-chunk size (bounds score VMEM to (TQ, L) per head)


# --------------------------------------------------------------------------
# Kernel pieces
# --------------------------------------------------------------------------
def _attention(xt_b, wqkv_ref, bqkv_ref, wo_ref, bo_ref, *, num_heads):
    """Multi-head self-attention for one batch element.

    xt_b: (L, E) bf16 time-major activations.  Weights pre-cast to bf16.
    Returns (L, E) f32.
    """
    f32, bf16 = jnp.float32, jnp.bfloat16
    L, E = xt_b.shape
    dh = E // num_heads
    scale = 1.0 / math.sqrt(dh)

    # Fused QKV projection: single (L,E)x(E,3E) MXU op, f32 accumulation.
    qkv = jnp.dot(xt_b, wqkv_ref[...], preferred_element_type=f32) + bqkv_ref[...]
    q = qkv[:, 0 * E:1 * E]                       # f32 (scores scaled in f32 later)
    k_b = qkv[:, 1 * E:2 * E].astype(bf16)        # cast hoisted out of head loop
    v_b = qkv[:, 2 * E:3 * E].astype(bf16)

    a_chunks = []
    for q0 in range(0, L, _TQ):                   # static loop over query chunks
        tq = min(_TQ, L - q0)
        q_blk = q[q0:q0 + tq, :].astype(bf16)     # (tq, E)
        head_outs = []
        for h in range(num_heads):                # static loop: true per-head matmuls
            qh = q_blk[:, h * dh:(h + 1) * dh]    # (tq, dh)
            kh = k_b[:, h * dh:(h + 1) * dh]      # (L, dh)
            vh = v_b[:, h * dh:(h + 1) * dh]      # (L, dh)
            s = lax.dot_general(qh, kh, (((1,), (1,)), ((), ())),
                                preferred_element_type=f32) * scale    # (tq, L)
            s = s - jnp.max(s, axis=-1, keepdims=True)
            p = jnp.exp(s)
            p = p * pl.reciprocal(jnp.sum(p, axis=-1, keepdims=True), approx=True)
            head_outs.append(jnp.dot(p.astype(bf16), vh,
                                     preferred_element_type=f32))      # (tq, dh)
        a_chunks.append(head_outs[0] if num_heads == 1
                        else jnp.concatenate(head_outs, axis=-1))      # (tq, E)
    a = a_chunks[0] if len(a_chunks) == 1 else jnp.concatenate(a_chunks, axis=0)
    return jnp.dot(a.astype(bf16), wo_ref[...],
                   preferred_element_type=f32) + bo_ref[...]           # (L, E)


def _causal_conv(h, w_ref, b_ref, *, kernel_size, dilation, padding):
    """Causal dilated conv as K accumulated matmuls (no lane-axis im2col concat).

    h: (L, Cin) f32; w_ref: (K, Cin, Cout) bf16; b_ref: (1, Cout) f32.
    Returns ReLU(conv + b): (L, Cout) f32.
    """
    f32, bf16 = jnp.float32, jnp.bfloat16
    L, Cin = h.shape
    Cout = w_ref.shape[-1]
    if padding > 0:
        h_pad = jnp.concatenate([jnp.zeros((padding, Cin), h.dtype), h], axis=0)
    else:
        h_pad = h
    h_pad_b = h_pad.astype(bf16)                  # single hoisted cast
    acc = jnp.zeros((L, Cout), f32)
    for k in range(kernel_size):                  # static taps, static slices
        acc = acc + jnp.dot(h_pad_b[k * dilation:k * dilation + L, :], w_ref[k],
                            preferred_element_type=f32)
    return jnp.maximum(acc + b_ref[...], 0.0)


def _fused_body(x_ref, wqkv_ref, bqkv_ref, wo_ref, bo_ref,
                w1_ref, b1_ref, w2_ref, b2_ref, wd_ref, bd_ref, o_ref,
                *, num_heads, kernel_size, dilation, padding):
    """Whole block for one batch element.  x block (1, L, C_in) -> out (1, L, C_out)."""
    f32, bf16 = jnp.float32, jnp.bfloat16

    xt = x_ref[0]                                 # (L, C_in) f32, already time-major
    xt_b = xt.astype(bf16)                        # hoisted: QKV proj + downsample

    # ---- self-attention ----
    y = _attention(xt_b, wqkv_ref, bqkv_ref, wo_ref, bo_ref, num_heads=num_heads)

    # ---- tcn_block1 / tcn_block2 (dropout = identity in eval) ----
    h1 = _causal_conv(y, w1_ref, b1_ref, kernel_size=kernel_size,
                      dilation=dilation, padding=padding)
    h2 = _causal_conv(h1, w2_ref, b2_ref, kernel_size=kernel_size,
                      dilation=dilation, padding=padding)

    # ---- residual (1x1 conv downsample) + final ReLU ----
    if wd_ref is not None:
        res = jnp.dot(xt_b, wd_ref[...], preferred_element_type=f32) + bd_ref[...]
    else:
        res = xt
    o_ref[0] = jnp.maximum(h2 + res, 0.0).astype(o_ref.dtype)


# --------------------------------------------------------------------------
# Wrapper
# --------------------------------------------------------------------------
def prepare_params(p):
    """One-time param prep: fuse QKV, pre-transpose, pre-cast weights to bf16."""
    bf16 = jnp.bfloat16
    return dict(
        wqkv=jnp.concatenate([p["wq"], p["wk"], p["wv"]], axis=0).T.astype(bf16),  # (E,3E)
        bqkv=jnp.concatenate([p["bq"], p["bk"], p["bv"]], axis=-1),                # (1,3E) f32
        wo_t=p["wo"].T.astype(bf16),                                               # (E,E)
        bo=p["bo"],
        w1=p["w1"].astype(bf16),                                                   # (K,Cin,Cout)
        b1=p["b1"],
        w2=p["w2"].astype(bf16),
        b2=p["b2"],
        wd=p["wd"].astype(bf16),                                                   # (Cin,Cout)
        bd=p["bd"],
    )


def _est_vmem_bytes(L, E, C_out, K, weight_args):
    f32 = 4
    tq = min(_TQ, L)
    c = max(E, C_out)
    weights = sum(int(w.size) * w.dtype.itemsize for w in weight_args)
    io = 2 * (L * E + L * C_out) * f32                     # double-buffered I/O tiles
    inter = (3 * L * E                                     # qkv
             + 2 * L * E                                   # k_b / v_b (slack)
             + 2 * tq * L                                  # scores + probs (one head live)
             + 3 * L * c                                   # y, h1, h2
             + (L + K * 8) * c) * f32                      # padded conv buffer
    return 2 * weights + io + inter


def temporal_block_with_attention(x, kp, *, num_heads, kernel_size,
                                  dilation, padding):
    """x: (B, n_inputs, L) float32 -> (B, n_outputs, L) float32 (single fused kernel)."""
    assert padding == dilation * (kernel_size - 1), "causal padding required"
    B, C_in, L = x.shape
    E = C_in
    assert E % num_heads == 0
    C_out = kp["b1"].shape[-1]
    K = kernel_size
    with_downsample = C_in != C_out

    # Time-major at the kernel boundary (no in-kernel XLU transposes); XLA folds
    # these layout changes around the custom call.
    xt = jnp.transpose(x, (0, 2, 1))                       # (B, L, C_in)

    def full(arr):
        n = arr.ndim
        return pl.BlockSpec(arr.shape, lambda b: (0,) * n)

    body = functools.partial(_fused_body, num_heads=num_heads, kernel_size=K,
                             dilation=dilation, padding=padding)

    if with_downsample:
        def kernel(x_ref, wqkv, bqkv, wo, bo, w1, b1, w2, b2, wd, bd, o_ref):
            body(x_ref, wqkv, bqkv, wo, bo, w1, b1, w2, b2, wd, bd, o_ref)
        weight_args = (kp["wqkv"], kp["bqkv"], kp["wo_t"], kp["bo"],
                       kp["w1"], kp["b1"], kp["w2"], kp["b2"], kp["wd"], kp["bd"])
    else:
        # No downsample: drop wd/bd entirely (no dead DMA / VMEM buffers).
        def kernel(x_ref, wqkv, bqkv, wo, bo, w1, b1, w2, b2, o_ref):
            body(x_ref, wqkv, bqkv, wo, bo, w1, b1, w2, b2, None, None, o_ref)
        weight_args = (kp["wqkv"], kp["bqkv"], kp["wo_t"], kp["bo"],
                       kp["w1"], kp["b1"], kp["w2"], kp["b2"])

    in_specs = ([pl.BlockSpec((1, L, C_in), lambda b: (b, 0, 0))]
                + [full(w) for w in weight_args])

    # Advisory cost estimate for XLA scheduling around the custom call.
    flops_per_b = (2 * L * E * 3 * E          # QKV projection
                   + 4 * L * L * E            # QK^T + PV (true MHA cost)
                   + 2 * L * E * E            # output projection
                   + 2 * L * K * E * C_out    # conv1
                   + 2 * L * K * C_out * C_out)  # conv2
    if with_downsample:
        flops_per_b += 2 * L * E * C_out
    cost = pl.CostEstimate(
        flops=int(B * flops_per_b),
        transcendentals=int(B * num_heads * L * L),
        bytes_accessed=int(x.size * 4
                           + sum(int(w.size) * w.dtype.itemsize for w in weight_args)
                           + B * L * C_out * 4))

    # Explicit VMEM budget: raises v5e's 16 MiB scoped default, stays within
    # v7x's 64 MiB physical per-TC VMEM.
    vmem_limit = int(min(max(2 * _est_vmem_bytes(L, E, C_out, K, weight_args),
                             32 * 1024 * 1024), 64 * 1024 * 1024))

    out_t = pl.pallas_call(
        kernel,
        out_shape=jax.ShapeDtypeStruct((B, L, C_out), jnp.float32),
        grid=(B,),
        in_specs=in_specs,
        out_specs=pl.BlockSpec((1, L, C_out), lambda b: (b, 0, 0)),
        compiler_params=pltpu.CompilerParams(
            dimension_semantics=("parallel",),             # shards B over v7x TCs
            vmem_limit_bytes=vmem_limit),
        cost_estimate=cost,
    )(xt, *weight_args)
    return jnp.transpose(out_t, (0, 2, 1))                 # back to (B, C_out, L)


# --------------------------------------------------------------------------
# Deterministic parameter init (weight-norm applied in plain-JAX glue)
# --------------------------------------------------------------------------
def init_params(key, *, num_heads, n_inputs, n_outputs, kernel_size):
    E = n_inputs
    ks = jax.random.split(key, 14)
    s = 0.3

    in_proj_w = jax.random.normal(ks[0], (3 * E, E), jnp.float32) * s
    in_proj_b = jax.random.normal(ks[1], (3 * E,), jnp.float32) * s
    wq, wk, wv = in_proj_w[:E], in_proj_w[E:2 * E], in_proj_w[2 * E:]
    bq = in_proj_b[:E].reshape(1, E)
    bk = in_proj_b[E:2 * E].reshape(1, E)
    bv = in_proj_b[2 * E:].reshape(1, E)
    wo = jax.random.normal(ks[2], (E, E), jnp.float32) * s
    bo = jax.random.normal(ks[3], (1, E), jnp.float32) * s

    def weight_norm_conv(kv, kg, c_out, c_in):
        v = jax.random.normal(kv, (c_out, c_in, 1, kernel_size), jnp.float32) * s
        g = jax.random.normal(kg, (c_out, 1, 1, 1), jnp.float32) * 0.1 + 1.0
        norm = jnp.sqrt(jnp.sum(v * v, axis=(1, 2, 3), keepdims=True))
        w_eff = g * v / norm                                  # (Cout, Cin, 1, K)
        return jnp.transpose(w_eff[:, :, 0, :], (2, 1, 0))    # (K, Cin, Cout)

    w1 = weight_norm_conv(ks[4], ks[5], n_outputs, n_inputs)
    b1 = (jax.random.normal(ks[6], (n_outputs,), jnp.float32) * s).reshape(1, -1)
    w2 = weight_norm_conv(ks[7], ks[8], n_outputs, n_outputs)
    b2 = (jax.random.normal(ks[9], (n_outputs,), jnp.float32) * s).reshape(1, -1)

    wd_full = jax.random.normal(ks[10], (n_outputs, n_inputs, 1), jnp.float32) * s
    wd = jnp.transpose(wd_full[:, :, 0], (1, 0))              # (Cin, Cout)
    bd = (jax.random.normal(ks[11], (n_outputs,), jnp.float32) * s).reshape(1, -1)

    return dict(wq=wq, wk=wk, wv=wv, bq=bq, bk=bk, bv=bv, wo=wo, bo=bo,
                w1=w1, b1=b1, w2=w2, b2=b2, wd=wd, bd=bd)


# --------------------------------------------------------------------------
# Pure-JAX reference (same math; matmul operands rounded to bf16 with f32
# accumulation so it matches the kernel's MXU numerics)
# --------------------------------------------------------------------------
def _mm(a, b):
    return jnp.matmul(a.astype(jnp.bfloat16), b.astype(jnp.bfloat16),
                      preferred_element_type=jnp.float32)


def reference_forward(x, p, *, num_heads, kernel_size, dilation, padding):
    B, C_in, L = x.shape
    E = C_in
    dh = E // num_heads
    C_out = p["b1"].shape[-1]
    xt = jnp.transpose(x, (0, 2, 1))                          # (B, L, E)

    q = _mm(xt, p["wq"].T) + p["bq"]
    k = _mm(xt, p["wk"].T) + p["bk"]
    v = _mm(xt, p["wv"].T) + p["bv"]
    qh = jnp.transpose(q.reshape(B, L, num_heads, dh), (0, 2, 1, 3))
    kh = jnp.transpose(k.reshape(B, L, num_heads, dh), (0, 2, 1, 3))
    vh = jnp.transpose(v.reshape(B, L, num_heads, dh), (0, 2, 1, 3))
    scores = _mm(qh, jnp.transpose(kh, (0, 1, 3, 2))) / math.sqrt(dh)
    attn = jax.nn.softmax(scores, axis=-1)
    a = _mm(attn, vh)                                         # (B, H, L, dh)
    a = jnp.transpose(a, (0, 2, 1, 3)).reshape(B, L, E)
    y = _mm(a, p["wo"].T) + p["bo"]

    def causal_conv(inp, w, b):
        acc = jnp.zeros((B, L, w.shape[2]), jnp.float32)
        for kk in range(kernel_size):
            shift = padding - kk * dilation
            if shift == 0:
                xs = inp
            else:
                xs = jnp.concatenate(
                    [jnp.zeros((B, shift, inp.shape[2]), inp.dtype),
                     inp[:, :L - shift, :]], axis=1)
            acc = acc + _mm(xs, w[kk])
        return jax.nn.relu(acc + b)

    h1 = causal_conv(y, p["w1"], p["b1"])
    h2 = causal_conv(h1, p["w2"], p["b2"])
    res = (_mm(xt, p["wd"]) + p["bd"]) if C_in != C_out else xt
    out = jax.nn.relu(h2 + res)
    return jnp.transpose(out, (0, 2, 1))


# --------------------------------------------------------------------------
if __name__ == "__main__":
    # Small shapes consistent with the module's forward (Conv1d-style input).
    B, L = 2, 16
    attention_heads = 2
    n_inputs, n_outputs = 4, 8
    kernel_size, dilation = 3, 2
    padding = dilation * (kernel_size - 1)                    # causal padding -> L preserved

    key = jax.random.PRNGKey(0)
    kx, kp = jax.random.split(key)
    x = jax.random.normal(kx, (B, n_inputs, L), jnp.float32)
    params = init_params(kp, num_heads=attention_heads, n_inputs=n_inputs,
                         n_outputs=n_outputs, kernel_size=kernel_size)
    kparams = prepare_params(params)                          # one-time weight prep

    out = temporal_block_with_attention(
        x, kparams, num_heads=attention_heads, kernel_size=kernel_size,
        dilation=dilation, padding=padding)
    out = jax.block_until_ready(out)

    ref = reference_forward(x, params, num_heads=attention_heads,
                            kernel_size=kernel_size, dilation=dilation,
                            padding=padding)
    # bf16-operand MXU in both paths -> tight agreement; tolerance covers the
    # approximate-reciprocal softmax normalization (inference-only kernel).
    np.testing.assert_allclose(np.asarray(out), np.asarray(ref),
                               rtol=2e-2, atol=2e-2)
    assert out.shape == (B, n_outputs, L)
    print("KERNEL_OK")
</pallas_src>

<mosaic_0001>
module attributes {stable_mosaic.version = 11 : i64} {
  func.func @kernel(%arg0: i32, %arg1: memref<1x16x4xf32, #tpu.memory_space<vmem>>, %arg2: memref<4x12xbf16, #tpu.memory_space<vmem>>, %arg3: memref<1x12xf32, #tpu.memory_space<vmem>>, %arg4: memref<4x4xbf16, #tpu.memory_space<vmem>>, %arg5: memref<1x4xf32, #tpu.memory_space<vmem>>, %arg6: memref<3x4x8xbf16, #tpu.memory_space<vmem>>, %arg7: memref<1x8xf32, #tpu.memory_space<vmem>>, %arg8: memref<3x8x8xbf16, #tpu.memory_space<vmem>>, %arg9: memref<1x8xf32, #tpu.memory_space<vmem>>, %arg10: memref<4x8xbf16, #tpu.memory_space<vmem>>, %arg11: memref<1x8xf32, #tpu.memory_space<vmem>>, %arg12: memref<1x16x8xf32, #tpu.memory_space<vmem>>) attributes {dimension_semantics = [#tpu.dimension_semantics<parallel>], iteration_bounds = array<i64: 2>, scalar_prefetch = 0 : i64, scratch_operands = 0 : i64, tpu.core_type = #tpu.core_type<tc>, window_params = [{transform_indices = @transform_0, window_bounds = array<i64: 1, 16, 4>}, {pipeline_mode = #tpu.pipeline_mode<synchronous>, transform_indices = @transform_1, window_bounds = array<i64: 4, 12>}, {pipeline_mode = #tpu.pipeline_mode<synchronous>, transform_indices = @transform_2, window_bounds = array<i64: 1, 12>}, {pipeline_mode = #tpu.pipeline_mode<synchronous>, transform_indices = @transform_3, window_bounds = array<i64: 4, 4>}, {pipeline_mode = #tpu.pipeline_mode<synchronous>, transform_indices = @transform_4, window_bounds = array<i64: 1, 4>}, {pipeline_mode = #tpu.pipeline_mode<synchronous>, transform_indices = @transform_5, window_bounds = array<i64: 3, 4, 8>}, {pipeline_mode = #tpu.pipeline_mode<synchronous>, transform_indices = @transform_6, window_bounds = array<i64: 1, 8>}, {pipeline_mode = #tpu.pipeline_mode<synchronous>, transform_indices = @transform_7, window_bounds = array<i64: 3, 8, 8>}, {pipeline_mode = #tpu.pipeline_mode<synchronous>, transform_indices = @transform_8, window_bounds = array<i64: 1, 8>}, {pipeline_mode = #tpu.pipeline_mode<synchronous>, transform_indices = @transform_9, window_bounds = array<i64: 4, 8>}, {pipeline_mode = #tpu.pipeline_mode<synchronous>, transform_indices = @transform_10, window_bounds = array<i64: 1, 8>}, {transform_indices = @transform_11, window_bounds = array<i64: 1, 16, 8>}]} {
    %c0 = arith.constant 0 : index
    %c0_0 = arith.constant 0 : index
    %c0_1 = arith.constant 0 : index
    %0 = vector.load %arg1[%c0, %c0_0, %c0_1] : memref<1x16x4xf32, #tpu.memory_space<vmem>>, vector<1x16x4xf32>
    %1 = vector.shape_cast %0 : vector<1x16x4xf32> to vector<16x4xf32>
    %2 = arith.truncf %1 : vector<16x4xf32> to vector<16x4xbf16>
    %c0_2 = arith.constant 0 : index
    %c0_3 = arith.constant 0 : index
    %3 = vector.load %arg2[%c0_2, %c0_3] : memref<4x12xbf16, #tpu.memory_space<vmem>>, vector<4x12xbf16>
    %cst = arith.constant dense<0.000000e+00> : vector<16x12xf32>
    %4 = tpu.matmul %2, %3, %cst {dimension_numbers = #tpu.dot_dimension_numbers<[1], [0], [0], [1], [0, 0, 1, 1], [], []>} : vector<16x4xbf16>, vector<4x12xbf16>, vector<16x12xf32> -> vector<16x12xf32>
    %c0_4 = arith.constant 0 : index
    %c0_5 = arith.constant 0 : index
    %5 = vector.load %arg3[%c0_4, %c0_5] : memref<1x12xf32, #tpu.memory_space<vmem>>, vector<1x12xf32>
    %6 = vector.broadcast %5 : vector<1x12xf32> to vector<16x12xf32>
    %7 = arith.addf %4, %6 : vector<16x12xf32>
    %8 = vector.extract_strided_slice %7 {offsets = [0, 0], sizes = [16, 4], strides = [1, 1]} : vector<16x12xf32> to vector<16x4xf32>
    %9 = vector.extract_strided_slice %7 {offsets = [0, 4], sizes = [16, 4], strides = [1, 1]} : vector<16x12xf32> to vector<16x4xf32>
    %10 = arith.truncf %9 : vector<16x4xf32> to vector<16x4xbf16>
    %11 = vector.extract_strided_slice %7 {offsets = [0, 8], sizes = [16, 4], strides = [1, 1]} : vector<16x12xf32> to vector<16x4xf32>
    %12 = arith.truncf %11 : vector<16x4xf32> to vector<16x4xbf16>
    %13 = arith.truncf %8 : vector<16x4xf32> to vector<16x4xbf16>
    %14 = vector.extract_strided_slice %13 {offsets = [0, 0], sizes = [16, 2], strides = [1, 1]} : vector<16x4xbf16> to vector<16x2xbf16>
    %15 = vector.extract_strided_slice %10 {offsets = [0, 0], sizes = [16, 2], strides = [1, 1]} : vector<16x4xbf16> to vector<16x2xbf16>
    %16 = vector.extract_strided_slice %12 {offsets = [0, 0], sizes = [16, 2], strides = [1, 1]} : vector<16x4xbf16> to vector<16x2xbf16>
    %cst_6 = arith.constant dense<0.000000e+00> : vector<16x16xf32>
    %17 = tpu.matmul %14, %15, %cst_6 {dimension_numbers = #tpu.dot_dimension_numbers<[1], [1], [0], [0], [0, 0, 1, 0], [], []>} : vector<16x2xbf16>, vector<16x2xbf16>, vector<16x16xf32> -> vector<16x16xf32>
    %cst_7 = arith.constant 0.707106769 : f32
    %18 = vector.broadcast %cst_7 : f32 to vector<16x16xf32>
    %19 = arith.mulf %17, %18 : vector<16x16xf32>
    %cst_8 = arith.constant dense<0xFF800000> : vector<16xf32>
    %20 = vector.multi_reduction <maximumf>, %19, %cst_8 [1] : vector<16x16xf32> to vector<16xf32>
    %21 = vector.shape_cast %20 : vector<16xf32> to vector<16x1xf32>
    %22 = vector.broadcast %21 : vector<16x1xf32> to vector<16x16xf32>
    %23 = arith.subf %19, %22 : vector<16x16xf32>
    %24 = math.exp %23 : vector<16x16xf32>
    %cst_9 = arith.constant dense<0.000000e+00> : vector<16xf32>
    %25 = vector.multi_reduction <add>, %24, %cst_9 [1] : vector<16x16xf32> to vector<16xf32>
    %26 = vector.shape_cast %25 : vector<16xf32> to vector<16x1xf32>
    %27 = tpu.reciprocal %26 {approx = true} : vector<16x1xf32> -> vector<16x1xf32>
    %28 = vector.broadcast %27 : vector<16x1xf32> to vector<16x16xf32>
    %29 = arith.mulf %24, %28 : vector<16x16xf32>
    %30 = arith.truncf %29 : vector<16x16xf32> to vector<16x16xbf16>
    %cst_10 = arith.constant dense<0.000000e+00> : vector<16x2xf32>
    %31 = tpu.matmul %30, %16, %cst_10 {dimension_numbers = #tpu.dot_dimension_numbers<[1], [0], [0], [1], [0, 0, 1, 1], [], []>} : vector<16x16xbf16>, vector<16x2xbf16>, vector<16x2xf32> -> vector<16x2xf32>
    %32 = vector.extract_strided_slice %13 {offsets = [0, 2], sizes = [16, 2], strides = [1, 1]} : vector<16x4xbf16> to vector<16x2xbf16>
    %33 = vector.extract_strided_slice %10 {offsets = [0, 2], sizes = [16, 2], strides = [1, 1]} : vector<16x4xbf16> to vector<16x2xbf16>
    %34 = vector.extract_strided_slice %12 {offsets = [0, 2], sizes = [16, 2], strides = [1, 1]} : vector<16x4xbf16> to vector<16x2xbf16>
    %cst_11 = arith.constant dense<0.000000e+00> : vector<16x16xf32>
    %35 = tpu.matmul %32, %33, %cst_11 {dimension_numbers = #tpu.dot_dimension_numbers<[1], [1], [0], [0], [0, 0, 1, 0], [], []>} : vector<16x2xbf16>, vector<16x2xbf16>, vector<16x16xf32> -> vector<16x16xf32>
    %cst_12 = arith.constant 0.707106769 : f32
    %36 = vector.broadcast %cst_12 : f32 to vector<16x16xf32>
    %37 = arith.mulf %35, %36 : vector<16x16xf32>
    %cst_13 = arith.constant dense<0xFF800000> : vector<16xf32>
    %38 = vector.multi_reduction <maximumf>, %37, %cst_13 [1] : vector<16x16xf32> to vector<16xf32>
    %39 = vector.shape_cast %38 : vector<16xf32> to vector<16x1xf32>
    %40 = vector.broadcast %39 : vector<16x1xf32> to vector<16x16xf32>
    %41 = arith.subf %37, %40 : vector<16x16xf32>
    %42 = math.exp %41 : vector<16x16xf32>
    %cst_14 = arith.constant dense<0.000000e+00> : vector<16xf32>
    %43 = vector.multi_reduction <add>, %42, %cst_14 [1] : vector<16x16xf32> to vector<16xf32>
    %44 = vector.shape_cast %43 : vector<16xf32> to vector<16x1xf32>
    %45 = tpu.reciprocal %44 {approx = true} : vector<16x1xf32> -> vector<16x1xf32>
    %46 = vector.broadcast %45 : vector<16x1xf32> to vector<16x16xf32>
    %47 = arith.mulf %42, %46 : vector<16x16xf32>
    %48 = arith.truncf %47 : vector<16x16xf32> to vector<16x16xbf16>
    %cst_15 = arith.constant dense<0.000000e+00> : vector<16x2xf32>
    %49 = tpu.matmul %48, %34, %cst_15 {dimension_numbers = #tpu.dot_dimension_numbers<[1], [0], [0], [1], [0, 0, 1, 1], [], []>} : vector<16x16xbf16>, vector<16x2xbf16>, vector<16x2xf32> -> vector<16x2xf32>
    %50 = tpu.concatenate %31, %49 in 1 : vector<16x2xf32>, vector<16x2xf32> -> vector<16x4xf32>
    %51 = arith.truncf %50 : vector<16x4xf32> to vector<16x4xbf16>
    %c0_16 = arith.constant 0 : index
    %c0_17 = arith.constant 0 : index
    %52 = vector.load %arg4[%c0_16, %c0_17] : memref<4x4xbf16, #tpu.memory_space<vmem>>, vector<4x4xbf16>
    %cst_18 = arith.constant dense<0.000000e+00> : vector<16x4xf32>
    %53 = tpu.matmul %51, %52, %cst_18 {dimension_numbers = #tpu.dot_dimension_numbers<[1], [0], [0], [1], [0, 0, 1, 1], [], []>} : vector<16x4xbf16>, vector<4x4xbf16>, vector<16x4xf32> -> vector<16x4xf32>
    %c0_19 = arith.constant 0 : index
    %c0_20 = arith.constant 0 : index
    %54 = vector.load %arg5[%c0_19, %c0_20] : memref<1x4xf32, #tpu.memory_space<vmem>>, vector<1x4xf32>
    %55 = vector.broadcast %54 : vector<1x4xf32> to vector<16x4xf32>
    %56 = arith.addf %53, %55 : vector<16x4xf32>
    %cst_21 = arith.constant 0.000000e+00 : f32
    %57 = vector.broadcast %cst_21 : f32 to vector<4x4xf32>
    %58 = tpu.concatenate %57, %56 in 0 : vector<4x4xf32>, vector<16x4xf32> -> vector<20x4xf32>
    %59 = arith.truncf %58 : vector<20x4xf32> to vector<20x4xbf16>
    %cst_22 = arith.constant 0.000000e+00 : f32
    %60 = vector.broadcast %cst_22 : f32 to vector<16x8xf32>
    %61 = vector.extract_strided_slice %59 {offsets = [0, 0], sizes = [16, 4], strides = [1, 1]} : vector<20x4xbf16> to vector<16x4xbf16>
    %c0_23 = arith.constant 0 : index
    %c0_24 = arith.constant 0 : index
    %c0_25 = arith.constant 0 : index
    %62 = vector.load %arg6[%c0_23, %c0_24, %c0_25] : memref<3x4x8xbf16, #tpu.memory_space<vmem>>, vector<1x4x8xbf16>
    %63 = vector.shape_cast %62 : vector<1x4x8xbf16> to vector<4x8xbf16>
    %cst_26 = arith.constant dense<0.000000e+00> : vector<16x8xf32>
    %64 = tpu.matmul %61, %63, %cst_26 {dimension_numbers = #tpu.dot_dimension_numbers<[1], [0], [0], [1], [0, 0, 1, 1], [], []>} : vector<16x4xbf16>, vector<4x8xbf16>, vector<16x8xf32> -> vector<16x8xf32>
    %65 = arith.addf %60, %64 : vector<16x8xf32>
    %66 = vector.extract_strided_slice %59 {offsets = [2, 0], sizes = [16, 4], strides = [1, 1]} : vector<20x4xbf16> to vector<16x4xbf16>
    %c1 = arith.constant 1 : index
    %c0_27 = arith.constant 0 : index
    %c0_28 = arith.constant 0 : index
    %67 = vector.load %arg6[%c1, %c0_27, %c0_28] : memref<3x4x8xbf16, #tpu.memory_space<vmem>>, vector<1x4x8xbf16>
    %68 = vector.shape_cast %67 : vector<1x4x8xbf16> to vector<4x8xbf16>
    %cst_29 = arith.constant dense<0.000000e+00> : vector<16x8xf32>
    %69 = tpu.matmul %66, %68, %cst_29 {dimension_numbers = #tpu.dot_dimension_numbers<[1], [0], [0], [1], [0, 0, 1, 1], [], []>} : vector<16x4xbf16>, vector<4x8xbf16>, vector<16x8xf32> -> vector<16x8xf32>
    %70 = arith.addf %65, %69 : vector<16x8xf32>
    %71 = vector.extract_strided_slice %59 {offsets = [4, 0], sizes = [16, 4], strides = [1, 1]} : vector<20x4xbf16> to vector<16x4xbf16>
    %c2 = arith.constant 2 : index
    %c0_30 = arith.constant 0 : index
    %c0_31 = arith.constant 0 : index
    %72 = vector.load %arg6[%c2, %c0_30, %c0_31] : memref<3x4x8xbf16, #tpu.memory_space<vmem>>, vector<1x4x8xbf16>
    %73 = vector.shape_cast %72 : vector<1x4x8xbf16> to vector<4x8xbf16>
    %cst_32 = arith.constant dense<0.000000e+00> : vector<16x8xf32>
    %74 = tpu.matmul %71, %73, %cst_32 {dimension_numbers = #tpu.dot_dimension_numbers<[1], [0], [0], [1], [0, 0, 1, 1], [], []>} : vector<16x4xbf16>, vector<4x8xbf16>, vector<16x8xf32> -> vector<16x8xf32>
    %75 = arith.addf %70, %74 : vector<16x8xf32>
    %c0_33 = arith.constant 0 : index
    %c0_34 = arith.constant 0 : index
    %76 = vector.load %arg7[%c0_33, %c0_34] : memref<1x8xf32, #tpu.memory_space<vmem>>, vector<1x8xf32>
    %77 = vector.broadcast %76 : vector<1x8xf32> to vector<16x8xf32>
    %78 = arith.addf %75, %77 : vector<16x8xf32>
    %cst_35 = arith.constant 0.000000e+00 : f32
    %79 = vector.broadcast %cst_35 : f32 to vector<16x8xf32>
    %80 = arith.maximumf %78, %79 : vector<16x8xf32>
    %cst_36 = arith.constant 0.000000e+00 : f32
    %81 = vector.broadcast %cst_36 : f32 to vector<4x8xf32>
    %82 = tpu.concatenate %81, %80 in 0 : vector<4x8xf32>, vector<16x8xf32> -> vector<20x8xf32>
    %83 = arith.truncf %82 : vector<20x8xf32> to vector<20x8xbf16>
    %cst_37 = arith.constant 0.000000e+00 : f32
    %84 = vector.broadcast %cst_37 : f32 to vector<16x8xf32>
    %85 = vector.extract_strided_slice %83 {offsets = [0, 0], sizes = [16, 8], strides = [1, 1]} : vector<20x8xbf16> to vector<16x8xbf16>
    %c0_38 = arith.constant 0 : index
    %c0_39 = arith.constant 0 : index
    %c0_40 = arith.constant 0 : index
    %86 = vector.load %arg8[%c0_38, %c0_39, %c0_40] : memref<3x8x8xbf16, #tpu.memory_space<vmem>>, vector<1x8x8xbf16>
    %87 = vector.shape_cast %86 : vector<1x8x8xbf16> to vector<8x8xbf16>
    %cst_41 = arith.constant dense<0.000000e+00> : vector<16x8xf32>
    %88 = tpu.matmul %85, %87, %cst_41 {dimension_numbers = #tpu.dot_dimension_numbers<[1], [0], [0], [1], [0, 0, 1, 1], [], []>} : vector<16x8xbf16>, vector<8x8xbf16>, vector<16x8xf32> -> vector<16x8xf32>
    %89 = arith.addf %84, %88 : vector<16x8xf32>
    %90 = vector.extract_strided_slice %83 {offsets = [2, 0], sizes = [16, 8], strides = [1, 1]} : vector<20x8xbf16> to vector<16x8xbf16>
    %c1_42 = arith.constant 1 : index
    %c0_43 = arith.constant 0 : index
    %c0_44 = arith.constant 0 : index
    %91 = vector.load %arg8[%c1_42, %c0_43, %c0_44] : memref<3x8x8xbf16, #tpu.memory_space<vmem>>, vector<1x8x8xbf16>
    %92 = vector.shape_cast %91 : vector<1x8x8xbf16> to vector<8x8xbf16>
    %cst_45 = arith.constant dense<0.000000e+00> : vector<16x8xf32>
    %93 = tpu.matmul %90, %92, %cst_45 {dimension_numbers = #tpu.dot_dimension_numbers<[1], [0], [0], [1], [0, 0, 1, 1], [], []>} : vector<16x8xbf16>, vector<8x8xbf16>, vector<16x8xf32> -> vector<16x8xf32>
    %94 = arith.addf %89, %93 : vector<16x8xf32>
    %95 = vector.extract_strided_slice %83 {offsets = [4, 0], sizes = [16, 8], strides = [1, 1]} : vector<20x8xbf16> to vector<16x8xbf16>
    %c2_46 = arith.constant 2 : index
    %c0_47 = arith.constant 0 : index
    %c0_48 = arith.constant 0 : index
    %96 = vector.load %arg8[%c2_46, %c0_47, %c0_48] : memref<3x8x8xbf16, #tpu.memory_space<vmem>>, vector<1x8x8xbf16>
    %97 = vector.shape_cast %96 : vector<1x8x8xbf16> to vector<8x8xbf16>
    %cst_49 = arith.constant dense<0.000000e+00> : vector<16x8xf32>
    %98 = tpu.matmul %95, %97, %cst_49 {dimension_numbers = #tpu.dot_dimension_numbers<[1], [0], [0], [1], [0, 0, 1, 1], [], []>} : vector<16x8xbf16>, vector<8x8xbf16>, vector<16x8xf32> -> vector<16x8xf32>
    %99 = arith.addf %94, %98 : vector<16x8xf32>
    %c0_50 = arith.constant 0 : index
    %c0_51 = arith.constant 0 : index
    %100 = vector.load %arg9[%c0_50, %c0_51] : memref<1x8xf32, #tpu.memory_space<vmem>>, vector<1x8xf32>
    %101 = vector.broadcast %100 : vector<1x8xf32> to vector<16x8xf32>
    %102 = arith.addf %99, %101 : vector<16x8xf32>
    %cst_52 = arith.constant 0.000000e+00 : f32
    %103 = vector.broadcast %cst_52 : f32 to vector<16x8xf32>
    %104 = arith.maximumf %102, %103 : vector<16x8xf32>
    %c0_53 = arith.constant 0 : index
    %c0_54 = arith.constant 0 : index
    %105 = vector.load %arg10[%c0_53, %c0_54] : memref<4x8xbf16, #tpu.memory_space<vmem>>, vector<4x8xbf16>
    %cst_55 = arith.constant dense<0.000000e+00> : vector<16x8xf32>
    %106 = tpu.matmul %2, %105, %cst_55 {dimension_numbers = #tpu.dot_dimension_numbers<[1], [0], [0], [1], [0, 0, 1, 1], [], []>} : vector<16x4xbf16>, vector<4x8xbf16>, vector<16x8xf32> -> vector<16x8xf32>
    %c0_56 = arith.constant 0 : index
    %c0_57 = arith.constant 0 : index
    %107 = vector.load %arg11[%c0_56, %c0_57] : memref<1x8xf32, #tpu.memory_space<vmem>>, vector<1x8xf32>
    %108 = vector.broadcast %107 : vector<1x8xf32> to vector<16x8xf32>
    %109 = arith.addf %106, %108 : vector<16x8xf32>
    %110 = arith.addf %104, %109 : vector<16x8xf32>
    %cst_58 = arith.constant 0.000000e+00 : f32
    %111 = vector.broadcast %cst_58 : f32 to vector<16x8xf32>
    %112 = arith.maximumf %110, %111 : vector<16x8xf32>
    %c0_59 = arith.constant 0 : index
    %c0_60 = arith.constant 0 : index
    %c0_61 = arith.constant 0 : index
    %113 = vector.load %arg12[%c0_59, %c0_60, %c0_61] : memref<1x16x8xf32, #tpu.memory_space<vmem>>, vector<1x16x8xf32>
    %114 = vector.shape_cast %113 : vector<1x16x8xf32> to vector<16x8xf32>
    %115 = vector.shape_cast %112 : vector<16x8xf32> to vector<1x16x8xf32>
    tpu.vector_store %arg12[%c0_59, %c0_60, %c0_61], %115 {strides = array<i32>} : memref<1x16x8xf32, #tpu.memory_space<vmem>>, vector<1x16x8xf32>,
    return
  }
  func.func @transform_0(%arg0: i32) -> (i32, i32, i32) {
    %c0_i32 = arith.constant 0 : i32
    %c0_i32_0 = arith.constant 0 : i32
    %c0_i32_1 = arith.constant 0 : i32
    return %arg0, %c0_i32, %c0_i32_0 : i32, i32, i32
  }
  func.func @transform_1(%arg0: i32) -> (i32, i32) {
    %c0_i32 = arith.constant 0 : i32
    %c0_i32_0 = arith.constant 0 : i32
    %c0_i32_1 = arith.constant 0 : i32
    return %c0_i32, %c0_i32_0 : i32, i32
  }
  func.func @transform_2(%arg0: i32) -> (i32, i32) {
    %c0_i32 = arith.constant 0 : i32
    %c0_i32_0 = arith.constant 0 : i32
    %c0_i32_1 = arith.constant 0 : i32
    return %c0_i32, %c0_i32_0 : i32, i32
  }
  func.func @transform_3(%arg0: i32) -> (i32, i32) {
    %c0_i32 = arith.constant 0 : i32
    %c0_i32_0 = arith.constant 0 : i32
    %c0_i32_1 = arith.constant 0 : i32
    return %c0_i32, %c0_i32_0 : i32, i32
  }
  func.func @transform_4(%arg0: i32) -> (i32, i32) {
    %c0_i32 = arith.constant 0 : i32
    %c0_i32_0 = arith.constant 0 : i32
    %c0_i32_1 = arith.constant 0 : i32
    return %c0_i32, %c0_i32_0 : i32, i32
  }
  func.func @transform_5(%arg0: i32) -> (i32, i32, i32) {
    %c0_i32 = arith.constant 0 : i32
    %c0_i32_0 = arith.constant 0 : i32
    %c0_i32_1 = arith.constant 0 : i32
    %c0_i32_2 = arith.constant 0 : i32
    return %c0_i32, %c0_i32_0, %c0_i32_1 : i32, i32, i32
  }
  func.func @transform_6(%arg0: i32) -> (i32, i32) {
    %c0_i32 = arith.constant 0 : i32
    %c0_i32_0 = arith.constant 0 : i32
    %c0_i32_1 = arith.constant 0 : i32
    return %c0_i32, %c0_i32_0 : i32, i32
  }
  func.func @transform_7(%arg0: i32) -> (i32, i32, i32) {
    %c0_i32 = arith.constant 0 : i32
    %c0_i32_0 = arith.constant 0 : i32
    %c0_i32_1 = arith.constant 0 : i32
    %c0_i32_2 = arith.constant 0 : i32
    return %c0_i32, %c0_i32_0, %c0_i32_1 : i32, i32, i32
  }
  func.func @transform_8(%arg0: i32) -> (i32, i32) {
    %c0_i32 = arith.constant 0 : i32
    %c0_i32_0 = arith.constant 0 : i32
    %c0_i32_1 = arith.constant 0 : i32
    return %c0_i32, %c0_i32_0 : i32, i32
  }
  func.func @transform_9(%arg0: i32) -> (i32, i32) {
    %c0_i32 = arith.constant 0 : i32
    %c0_i32_0 = arith.constant 0 : i32
    %c0_i32_1 = arith.constant 0 : i32
    return %c0_i32, %c0_i32_0 : i32, i32
  }
  func.func @transform_10(%arg0: i32) -> (i32, i32) {
    %c0_i32 = arith.constant 0 : i32
    %c0_i32_0 = arith.constant 0 : i32
    %c0_i32_1 = arith.constant 0 : i32
    return %c0_i32, %c0_i32_0 : i32, i32
  }
  func.func @transform_11(%arg0: i32) -> (i32, i32, i32) {
    %c0_i32 = arith.constant 0 : i32
    %c0_i32_0 = arith.constant 0 : i32
    %c0_i32_1 = arith.constant 0 : i32
    return %arg0, %c0_i32, %c0_i32_0 : i32, i32, i32
  }
}

</mosaic_0001>

<bundles_post_ra>
// kernel: tpu_custom_call.1
= control target key start
LH: loop header
LB: loop body
LE: loop exit
PB: predicated region body
PF: predicated region fallthrough
CT: control target
= control target key end

     0   :  { %s1487_s17 = smov 0   ;;  %s1648_s0 = inlined_call_operand.vmem [shape: f32[2,16,4], index: 0, kind: input, shape index: {}]   ;;  %s1649_s1 = inlined_call_operand.vmem [shape: bf16[4,12], index: 1, kind: input, shape index: {}]   ;;  %s1650_s2 = inlined_call_operand.vmem [shape: f32[1,12], index: 2, kind: input, shape index: {}]   ;;  %s1651_s3 = inlined_call_operand.vmem [shape: bf16[4,4], index: 3, kind: input, shape index: {}]   ;;  %s1652_s4 = inlined_call_operand.vmem [shape: f32[1,4], index: 4, kind: input, shape index: {}]   ;;  %s1653_s5 = inlined_call_operand.vmem [shape: bf16[3,4,8], index: 5, kind: input, shape index: {}]   ;;  %s1654_s6 = inlined_call_operand.vmem [shape: f32[1,8], index: 6, kind: input, shape index: {}]   ;;  %s1655_s7 = inlined_call_operand.vmem [shape: bf16[3,8,8], index: 7, kind: input, shape index: {}]   ;;  %s1656_s8 = inlined_call_operand.vmem [shape: f32[1,8], index: 8, kind: input, shape index: {}]   ;;  %s1657_s9 = inlined_call_operand.vmem [shape: bf16[4,8], index: 9, kind: input, shape index: {}]   ;;  %s1658_s10 = inlined_call_operand.vmem [shape: f32[1,8], index: 10, kind: input, shape index: {}]   ;;  %s1659_s11 = inlined_call_operand.vmem [shape: f32[2,16,8], index: 11, kind: output, shape index: {}]  }
   0x1 LB: > { %s1235_s18 = sadd.s32 4294967295, %s1417_s17   ;;  %p1239_p0 = scmp.ge.s32.totalorder %s1417_s17, 1  ;;  %s1417_s17 = sphi %s1487_s17, %s21_s17  }
   0x2   : > { %p337_p1 = scmp.lt.s32.totalorder %s1417_s17, 3 }
   0x4   : > { %p338_p2 = pnand %p1239_p0, %p337_p1 }
   0x5   : > { %p377_p3 = scmp.lt.s32.totalorder (!%p338_p2), %s1235_s18, 1  ;;  %s1421_s27 = smov (!%p338_p2), 126  }
   0x6   : > { %341 = sbr.rel (%p338_p2) target bundleno = 1823 (0x71f), region = 64  ;;  %s1422_s28 = smov (!%p338_p2), 124  }
   0x7   : > { %s1423_s29 = smov (!%p338_p2), 122   ;;  %s1424_s30 = smov (!%p338_p2), 118  }
   0x8   : > { %s1425_s12 = smov (!%p338_p2), 120   ;;  %s1426_s15 = smov (!%p338_p2), 2  }
   0xb   : > { %v391_v0 = vld [vmem:[%s1649_s1] sm:$0x3]  ;;  %vm403_vm0 = vcmask 1041408   ;;  %v1419_v1 = vmov 0.0   ;;  %vm1420_vm1 = vmmov 0   ;;  %s1661_s18 = smov (!%p377_p3, %s1235_s18), 1 }
   0xc   : > { %1296 = vmatprep.subr.bf16.mxu0 %v1419_v1  ;;  %v405_v2 = vsel %vm403_vm0, %v391_v0, 0  ;;  %1298 = vmatprep.mubr.msk.bf16.mxu0 %vm1420_vm1, %v1419_v1  ;;  %s1268_s21 = sshll.u32 %s1661_s18, 4  ;;  %vm399_vm2 = vcmask 31744   ;;  %v1244_v7 = vld [vmem:[%s1650_s2] ss:$0 sm:$0xff]  ;;  %vm452_vm3 = vcmask 15360  }
   0xd   : > { %1297 = vmatpush3.bf16.msra.mxu0 %v405_v2  ;;  %1302 = vmatprep.subr.bf16.mxu1 %v1419_v1  ;;  %s381_s24 = scalar_lea.vmem %s1648_s0, %s1268_s21  ;;  %vm502_vm4 = vcmask 130048   ;;  %vm764_vm5 = vcmask 1043456   ;;  %vm779_vm6 = vcmask 1046528   ;;  %vm879_vm7 = vcmask 1045504  }
   0xe   : > { %1304 = vmatprep.mubr.msk.bf16.mxu1 %vm1420_vm1, %v1419_v1  ;;  %1308 = vmatprep.subr.bf16.mxu0 %v1419_v1  ;;  %v388_v3 = vld [vmem:[%s381_s24] sm:$0xff]  ;;  %v389_v4 = vld [vmem:[%s381_s24 + $0x8] sm:$0xff]  ;;  %vm962_vm8 = vcmask 64512  }
   0xf   : > { %v1514_v5 = vpack.c.bf16 %v389_v4, %v388_v3 }
  0x11   : > { %1299 = vmatmul.mubr.msk.bf16.vlgmr.msra.gmra.mxu0 %vm399_vm2, %v1514_v5 }
  0x12   : > { %1310 = vmatprep.mubr.msk.bf16.mxu0 %vm1420_vm1, %v1419_v1 }
  0xd1   : > { %v441_v6 = vpop.f32.mrf.mxu0 }
  0xd2   : > { %v442_v10 = vadd.f32 %v1244_v7, %v441_v6 }
  0xd3   : > { %v1300_v8 = vpop.f32.mrf.mxu0 }
  0xd5   : > { %v444_v9 = vpop.f32.mrf.mxu0 }
  0xd6   : > { %v445_v11 = vadd.f32 %v1244_v7, %v444_v9  ;;  %v707_v9 = vld [vmem:[%s1651_s3] sm:$0x3] }
  0xd7   : > { %v1301_v12 = vpop.f32.mrf.mxu0 }
  0xd8   : > { %v1523_v13 = vpack.c.bf16 %v445_v11, %v442_v10  ;;  %v719_v10 = vsel %vm403_vm0, %v707_v9, 0 }
  0xda   : > { %573 = vrot.lane.b32.xlu1 %v1523_v13, %s1421_s27  ;;  %450 = vrot.lane.b32.xlu0 %v1523_v13, %s1422_s28  ;;  %s386_s27 = scalar_lea.vmem %s1659_s11, %s1268_s21 }
  0xde   : > { %575 = vrot.lane.b32.xlu0 %v1523_v13, %s1423_s29 }
 0x14c   : > { %v451_v14 = vpop.permute.xlu0 %450  ;;  %v574_v18 = vpop.permute.xlu1 %573 }
 0x14d   : > { %v457_v15 = vsel %vm452_vm3, %v451_v14, 0 }
 0x14e   : > { %1303 = vmatpush3.bf16.xpose.msra.mxu1 %v457_v15 }
 0x14f   : > { %1314 = vmatprep.subr.bf16.mxu1 %v1419_v1 }
 0x150   : > { %v576_v16 = vpop.permute.xlu0 %575 }
 0x151   : > { %v581_v17 = vsel %vm452_vm3, %v576_v16, 0 }
 0x155   : > { %1305 = vmatmul.mubr.msk.bf16.vlgmr.msra.gmra.mxu1 %vm452_vm3, %v1523_v13 }
 0x156   : > { %1315 = vmatpush3.bf16.xpose.msra.mxu1 %v581_v17  ;;  %1316 = vmatprep.mubr.msk.bf16.mxu1 %vm1420_vm1, %v1419_v1 }
 0x157   : > { %1326 = vmatprep.subr.bf16.mxu1 %v1419_v1 }
 0x15d   : > { %1317 = vmatmul.mubr.msk.bf16.vlgmr.msra.gmra.mxu1 %vm452_vm3, %v574_v18 }
 0x15e   : > { %1328 = vmatprep.mubr.msk.bf16.mxu1 %vm1420_vm1, %v1419_v1  ;;  %1327 = vmatpush3.bf16.msra.mxu1 %v719_v10 }
 0x15f   : > { %1338 = vmatprep.subr.bf16.mxu1 %v1419_v1 }
 0x215   : > { %v493_v19 = vpop.f32.mrf.mxu1 }
 0x216   : > { %v500_v20 = vmul.f32 0.70710677, %v493_v19 }
 0x217   : > { %v1306_v21 = vpop.f32.mrf.mxu1 }
 0x218   : > { %v503_v22 = vsel %vm502_vm4, %v500_v20, -inf }
 0x219   : > { %504 = vmax.xlane.f32.xlu1 %v503_v22  ;;  %v496_v23 = vpop.f32.mrf.mxu1 }
 0x21a   : > { %v501_v24 = vmul.f32 0.70710677, %v496_v23 }
 0x21b   : > { %v1307_v25 = vpop.f32.mrf.mxu1 }
 0x21c   : > { %v506_v26 = vsel %vm502_vm4, %v501_v24, -inf }
 0x21d   : > { %507 = vmax.xlane.f32.xlu0 %v506_v26  ;;  %v617_v27 = vpop.f32.mrf.mxu1  ;;  %v774_v26 = vld [vmem:[%s1653_s5] sm:$0x3] }
 0x21e   : > { %v624_v28 = vmul.f32 0.70710677, %v617_v27  ;;  %v834_v27 = vsel %vm403_vm0, %v774_v26, 0 }
 0x21f   : > { %v1318_v29 = vpop.f32.mrf.mxu1 }
 0x220   : > { %v626_v30 = vsel %vm502_vm4, %v624_v28, -inf }
 0x221   : > { %627 = vmax.xlane.f32.xlu0 %v626_v30  ;;  %v620_v31 = vpop.f32.mrf.mxu1  ;;  %v1250_v30 = vld [vmem:[%s1652_s4] ss:$0 sm:$0xff] }
 0x222   : > { %v625_v32 = vmul.f32 0.70710677, %v620_v31 }
 0x223   : > { %v1319_v33 = vpop.f32.mrf.mxu1 }
 0x224   : > { %v629_v34 = vsel %vm502_vm4, %v625_v32, -inf }
 0x225   : > { %630 = vmax.xlane.f32.xlu1 %v629_v34 }
 0x2a2   : > { %v505_v35 = vpop.xlane.xlu1 %504 }
 0x2a3   : > { %v509_v36 = vsub.f32 %v500_v20, %v505_v35 }
 0x2a5   : > { %v511_v37 = vmul.f32 1.442695, %v509_v36 }
 0x2a6   : > { %v508_v38 = vpop.xlane.xlu0 %507 }
 0x2a7   : > { %1395 = vpow2.f32 %v511_v37  ;;  %v510_v39 = vsub.f32 %v501_v24, %v508_v38 }
 0x2a9   : > { %v513_v40 = vmul.f32 1.442695, %v510_v39 }
 0x2aa   : > { %v628_v41 = vpop.xlane.xlu0 %627 }
 0x2ab   : > { %1397 = vpow2.f32 %v513_v40  ;;  %v632_v42 = vsub.f32 %v624_v28, %v628_v41  ;;  %v1252_v28 = vld [vmem:[%s1653_s5 + $0x2] sm:$0x3] }
 0x2ac   : > { %v787_v29 = vsel %vm403_vm0, %v1252_v28, 0 }
 0x2ad   : > { %v634_v43 = vmul.f32 1.442695, %v632_v42 }
 0x2ae   : > { %v631_v44 = vpop.xlane.xlu1 %630 }
 0x2af   : > { %1399 = vpow2.f32 %v634_v43  ;;  %v633_v45 = vsub.f32 %v625_v32, %v631_v44  ;;  %v1255_v43 = vld [vmem:[%s1653_s5 + $0x4] sm:$0x3] }
 0x2b1   : > { %v636_v46 = vmul.f32 1.442695, %v633_v45 }
 0x2b3   : > { %1401 = vpow2.f32 %v636_v46  ;;  %v887_v46 = vsel %vm403_vm0, %v1255_v43, 0 }
 0x2b4   : > { %v1396_v47 = vpop.eup %1395 }
 0x2b5   : > { %v515_v48 = vsel %vm502_vm4, %v1396_v47, 0.0 }
 0x2b6   : > { %516 = vadd.xlane.f32.xlu0 %v515_v48 }
 0x2b8   : > { %v1398_v49 = vpop.eup %1397 }
 0x2b9   : > { %v518_v50 = vsel %vm502_vm4, %v1398_v49, 0.0 }
 0x2ba   : > { %519 = vadd.xlane.f32.xlu1 %v518_v50 }
 0x2bc   : > { %v1400_v51 = vpop.eup %1399 }
 0x2bd   : > { %v638_v52 = vsel %vm502_vm4, %v1400_v51, 0.0 }
 0x2be   : > { %639 = vadd.xlane.f32.xlu0 %v638_v52 }
 0x2c0   : > { %v1402_v53 = vpop.eup %1401 }
 0x2c1   : > { %v641_v54 = vsel %vm502_vm4, %v1402_v53, 0.0 }
 0x2c2   : > { %642 = vadd.xlane.f32.xlu1 %v641_v54 }
 0x2d3   : > { %649 = vrot.lane.b32.xlu1 %v1523_v13, %s1424_s30 }
 0x2d4   : > { %526 = vrot.lane.b32.xlu0 %v1523_v13, %s1425_s12 }
 0x33f   : > { %v517_v55 = vpop.xlane.xlu0 %516 }
 0x340   : > { %1403 = vrcp.f32 %v517_v55 }
 0x343   : > { %v520_v56 = vpop.xlane.xlu1 %519 }
 0x344   : > { %1405 = vrcp.f32 %v520_v56 }
 0x347   : > { %v640_v57 = vpop.xlane.xlu0 %639 }
 0x348   : > { %1407 = vrcp.f32 %v640_v57 }
 0x34b   : > { %v643_v58 = vpop.xlane.xlu1 %642  ;;  %v527_v59 = vpop.permute.xlu0 %526 }
 0x34c   : > { %1409 = vrcp.f32 %v643_v58  ;;  %1309 = vmatpush3.bf16.msra.mxu0 %v527_v59 }
 0x34d   : > { %1320 = vmatprep.subr.bf16.mxu0 %v1419_v1  ;;  %v1404_v60 = vpop.eup %1403 }
 0x34e   : > { %v523_v62 = vmul.f32 %v1404_v60, %v1396_v47 }
 0x34f   : > { %v650_v2 = vpop.permute.xlu1 %649 }
 0x351   : > { %v1406_v61 = vpop.eup %1405 }
 0x352   : > { %v524_v63 = vmul.f32 %v1406_v61, %v1398_v49 }
 0x354   : > { %v525_v0 = vpack.c.bf16 %v524_v63, %v523_v62 }
 0x355   : > { %v1408_v3 = vpop.eup %1407 }
 0x356   : > { %1311 = vmatmul.mubr.msk.bf16.vlgmr.msra.gmra.mxu0 %vm502_vm4, %v525_v0  ;;  %v646_v6 = vmul.f32 %v1408_v3, %v1400_v51  ;;  %v954_v51 = vld [vmem:[%s1655_s7] sm:$0xf] }
 0x357   : > { %1321 = vmatpush3.bf16.msra.mxu0 %v650_v2  ;;  %1322 = vmatprep.mubr.msk.bf16.mxu0 %vm1420_vm1, %v1419_v1  ;;  %v1014_v52 = vsel %vm764_vm5, %v954_v51, 0  ;;  %v1257_v2 = vld [vmem:[%s1654_s6] ss:$0 sm:$0xff] }
 0x358   : > { %1332 = vmatprep.subr.bf16.mxu0 %v1419_v1 }
 0x359   : > { %v1410_v4 = vpop.eup %1409 }
 0x35a   : > { %v647_v7 = vmul.f32 %v1410_v4, %v1402_v53  ;;  %v1258_v53 = vld [vmem:[%s1655_s7 + $0x4] sm:$0xf] }
 0x35b   : > { %v967_v54 = vsel %vm764_vm5, %v1258_v53, 0 }
 0x35c   : > { %v648_v8 = vpack.c.bf16 %v647_v7, %v646_v6 }
 0x35e   : > { %1323 = vmatmul.mubr.msk.bf16.vlgmr.msra.gmra.mxu0 %vm502_vm4, %v648_v8 }
 0x35f   : > { %1334 = vmatprep.mubr.msk.bf16.mxu0 %vm1420_vm1, %v1419_v1  ;;  %1333 = vmatpush3.bf16.msra.mxu0 %v787_v29 }
 0x360   : > { %1344 = vmatprep.subr.bf16.mxu0 %v1419_v1 }
 0x416   : > { %v566_v11 = vpop.f32.mrf.mxu0 }
 0x418   : > { %v1312_v12 = vpop.f32.mrf.mxu0 }
 0x41a   : > { %v569_v13 = vpop.f32.mrf.mxu0 }
 0x41c   : > { %v1313_v14 = vpop.f32.mrf.mxu0 }
 0x41e   : > { %v689_v15 = vpop.f32.mrf.mxu0 }
 0x420   : > { %v1324_v16 = vpop.f32.mrf.mxu0 }
 0x421   : > { %v1122_v16 = vld [vmem:[%s1657_s9] sm:$0x3] }
 0x422   : > { %v692_v17 = vpop.f32.mrf.mxu0 }
 0x423   : > { %v1390_v18 = vpack.i.bf16 %v692_v17, %v689_v15 }
 0x424   : > { %v1325_v19 = vpop.f32.mrf.mxu0 }
 0x425   : > { %1391 = vrot.lane.b32.xlu1 %v1390_v18, %s1426_s15 }
 0x497   : > { %v1392_v20 = vpop.permute.xlu1 %1391 }
 0x498   : > { %v1394_v21 = vunpack.i.h.bf16 %v1392_v20  ;;  %v1393_v22 = vunpack.i.l.bf16 %v1392_v20 }
 0x49a   : > { %v705_v23 = vsel %vm452_vm3, %v569_v13, %v1394_v21  ;;  %v704_v24 = vsel %vm452_vm3, %v566_v11, %v1393_v22  ;;  %v1261_v21 = vld [vmem:[%s1655_s7 + $0x8] sm:$0xf]  ;;  %v1131_v22 = vsel %vm403_vm0, %v1122_v16, 0 }
 0x49b   : > { %v706_v25 = vpack.c.bf16 %v705_v23, %v704_v24 }
 0x49d   : > { %1329 = vmatmul.mubr.msk.bf16.vlgmr.msra.gmra.mxu1 %vm399_vm2, %v706_v25  ;;  %v1066_v25 = vsel %vm764_vm5, %v1261_v21, 0 }
 0x49e   : > { %1340 = vmatprep.mubr.msk.bf16.mxu1 %vm1420_vm1, %v1419_v1  ;;  %1339 = vmatpush3.bf16.msra.mxu1 %v834_v27 }
 0x49f   : > { %1350 = vmatprep.subr.bf16.mxu1 %v1419_v1 }
 0x55d   : > { %v755_v31 = vpop.f32.mrf.mxu1 }
 0x55e   : > { %v756_v32 = vadd.f32 %v1250_v30, %v755_v31 }
 0x55f   : > { %v1330_v33 = vpop.f32.mrf.mxu1 }
 0x560   : > { %v765_v35 = vrot.slane %v756_v32, 4 }
 0x561   : > { %v758_v34 = vpop.f32.mrf.mxu1 }
 0x562   : > { %v759_v36 = vadd.f32 %v1250_v30, %v758_v34  ;;  %v771_v39 = vsel %vm764_vm5, 0.0, %v765_v35 }
 0x563   : > { %v1331_v37 = vpop.f32.mrf.mxu1 }
 0x564   : > { %v766_v38 = vrot.slane %v759_v36, 4 }
 0x566   : > { %v767_v40 = vsel %vm764_vm5, %v765_v35, %v766_v38  ;;  %v773_v41 = vpack.c.bf16 %v766_v38, %v766_v38 }
 0x567   : > { %v772_v42 = vpack.c.bf16 %v767_v40, %v771_v39  ;;  %v1264_v40 = vld [vmem:[%s1658_s10] ss:$0 sm:$0xff] }
 0x568   : > { %v781_v44 = vrot.slane %v773_v41, 1  ;;  %v881_v48 = vrot.slane %v773_v41, 2  ;;  %v1263_v41 = vld [vmem:[%s1656_s8] ss:$0 sm:$0xff] }
 0x569   : > { %1341 = vmatmul.mubr.msk.bf16.vlgmr.msra.gmra.mxu1 %vm399_vm2, %v772_v42  ;;  %v780_v45 = vrot.slane %v772_v42, 1  ;;  %v880_v49 = vrot.slane %v772_v42, 2 }
 0x56a   : > { %1352 = vmatprep.mubr.msk.bf16.mxu1 %vm1420_vm1, %v1419_v1  ;;  %1351 = vmatpush3.bf16.msra.mxu1 %v967_v54 }
 0x56b   : > { %v782_v47 = vsel %vm779_vm6, %v780_v45, %v781_v44  ;;  %v882_v50 = vsel %vm879_vm7, %v880_v49, %v881_v48  ;;  %1362 = vmatprep.subr.bf16.mxu1 %v1419_v1 }
 0x56c   : > { %1335 = vmatmul.mubr.msk.bf16.vlgmr.msra.gmra.mxu0 %vm399_vm2, %v782_v47 }
 0x56d   : > { %1345 = vmatpush3.bf16.msra.mxu0 %v887_v46  ;;  %1346 = vmatprep.mubr.msk.bf16.mxu0 %vm1420_vm1, %v1419_v1 }
 0x56e   : > { %1356 = vmatprep.subr.bf16.mxu0 %v1419_v1 }
 0x574   : > { %1347 = vmatmul.mubr.msk.bf16.vlgmr.msra.gmra.mxu0 %vm399_vm2, %v882_v50 }
 0x575   : > { %1358 = vmatprep.mubr.msk.bf16.mxu0 %vm1420_vm1, %v1419_v1  ;;  %1357 = vmatpush3.bf16.msra.mxu0 %v1014_v52 }
 0x576   : > { %1368 = vmatprep.subr.bf16.mxu0 %v1419_v1 }
 0x629   : > { %v870_v55 = vpop.f32.mrf.mxu1 }
 0x62b   : > { %v1342_v56 = vpop.f32.mrf.mxu1 }
 0x62c   : > { %v823_v57 = vpop.f32.mrf.mxu0 }
 0x62d   : > { %v873_v58 = vpop.f32.mrf.mxu1  ;;  %v871_v63 = vadd.f32 %v870_v55, %v823_v57 }
 0x62e   : > { %v1336_v59 = vpop.f32.mrf.mxu0 }
 0x62f   : > { %v1343_v60 = vpop.f32.mrf.mxu1 }
 0x630   : > { %v826_v61 = vpop.f32.mrf.mxu0 }
 0x631   : > { %v874_v6 = vadd.f32 %v873_v58, %v826_v61 }
 0x632   : > { %v1337_v62 = vpop.f32.mrf.mxu0 }
 0x634   : > { %v923_v0 = vpop.f32.mrf.mxu0 }
 0x635   : > { %v930_v3 = vadd.f32 %v923_v0, %v871_v63 }
 0x636   : > { %v1348_v4 = vpop.f32.mrf.mxu0 }
 0x637   : > { %v939_v7 = vadd.f32 %v1257_v2, %v930_v3 }
 0x638   : > { %v926_v8 = vpop.f32.mrf.mxu0 }
 0x639   : > { %v941_v9 = vmax.f32 %v939_v7, 0.0  ;;  %v931_v10 = vadd.f32 %v926_v8, %v874_v6 }
 0x63a   : > { %v1349_v11 = vpop.f32.mrf.mxu0 }
 0x63b   : > { %v940_v12 = vadd.f32 %v1257_v2, %v931_v10  ;;  %v945_v13 = vrot.slane %v941_v9, 4 }
 0x63d   : > { %v942_v14 = vmax.f32 %v940_v12, 0.0  ;;  %v951_v17 = vsel %vm764_vm5, 0.0, %v945_v13 }
 0x63f   : > { %v946_v15 = vrot.slane %v942_v14, 4 }
 0x641   : > { %v947_v18 = vsel %vm764_vm5, %v945_v13, %v946_v15  ;;  %v953_v19 = vpack.c.bf16 %v946_v15, %v946_v15 }
 0x642   : > { %v952_v20 = vpack.c.bf16 %v947_v18, %v951_v17 }
 0x643   : > { %v960_v23 = vrot.slane %v953_v19, 1  ;;  %v1060_v27 = vrot.slane %v953_v19, 2 }
 0x644   : > { %1359 = vmatmul.mubr.msk.bf16.vlgmr.msra.gmra.mxu0 %vm962_vm8, %v952_v20  ;;  %v959_v24 = vrot.slane %v952_v20, 1  ;;  %v1059_v28 = vrot.slane %v952_v20, 2 }
 0x645   : > { %1369 = vmatpush3.bf16.msra.mxu0 %v1131_v22  ;;  %1370 = vmatprep.mubr.msk.bf16.mxu0 %vm1420_vm1, %v1419_v1 }
 0x646   : > { %v961_v26 = vsel %vm779_vm6, %v959_v24, %v960_v23  ;;  %v1061_v29 = vsel %vm879_vm7, %v1059_v28, %v1060_v27 }
 0x647   : > { %1353 = vmatmul.mubr.msk.bf16.vlgmr.msra.gmra.mxu1 %vm962_vm8, %v961_v26 }
 0x648   : > { %1363 = vmatpush3.bf16.msra.mxu1 %v1066_v25  ;;  %1364 = vmatprep.mubr.msk.bf16.mxu1 %vm1420_vm1, %v1419_v1 }
 0x64c   : > { %1371 = vmatmul.mubr.msk.bf16.vlgmr.msra.gmra.mxu0 %vm399_vm2, %v1514_v5 }
 0x64f   : > { %1365 = vmatmul.mubr.msk.bf16.vlgmr.msra.gmra.mxu1 %vm962_vm8, %v1061_v29 }
 0x704   : > { %v1050_v30 = vpop.f32.mrf.mxu0 }
 0x706   : > { %v1360_v31 = vpop.f32.mrf.mxu0 }
 0x707   : > { %v1003_v32 = vpop.f32.mrf.mxu1 }
 0x708   : > { %v1053_v33 = vpop.f32.mrf.mxu0  ;;  %v1051_v39 = vadd.f32 %v1050_v30, %v1003_v32 }
 0x709   : > { %v1354_v34 = vpop.f32.mrf.mxu1 }
 0x70a   : > { %v1361_v35 = vpop.f32.mrf.mxu0 }
 0x70b   : > { %v1006_v36 = vpop.f32.mrf.mxu1 }
 0x70c   : > { %v1167_v37 = vpop.f32.mrf.mxu0  ;;  %v1054_v45 = vadd.f32 %v1053_v33, %v1006_v36 }
 0x70d   : > { %v1355_v38 = vpop.f32.mrf.mxu1  ;;  %v1168_v46 = vadd.f32 %v1264_v40, %v1167_v37 }
 0x70e   : > { %v1372_v1 = vpop.f32.mrf.mxu0 }
 0x70f   : > { %v1102_v5 = vpop.f32.mrf.mxu1 }
 0x710   : > { %v1109_v42 = vadd.f32 %v1102_v5, %v1051_v39  ;;  %v1170_v43 = vpop.f32.mrf.mxu0 }
 0x711   : > { %v1366_v44 = vpop.f32.mrf.mxu1  ;;  %v1171_v56 = vadd.f32 %v1264_v40, %v1170_v43 }
 0x712   : > { %v1118_v47 = vadd.f32 %v1263_v41, %v1109_v42  ;;  %v1373_v48 = vpop.f32.mrf.mxu0 }
 0x713   : > { %v1105_v49 = vpop.f32.mrf.mxu1 }
 0x714   : > { %v1120_v50 = vmax.f32 %v1118_v47, 0.0  ;;  %v1110_v51 = vadd.f32 %v1105_v49, %v1054_v45 }
 0x715   : > { %v1367_v52 = vpop.f32.mrf.mxu1 }
 0x716   : > { %v1174_v53 = vadd.f32 %v1168_v46, %v1120_v50  ;;  %v1119_v54 = vadd.f32 %v1263_v41, %v1110_v51 }
 0x718   : > { %v1176_v55 = vmax.f32 %v1174_v53, 0.0  ;;  %v1121_v57 = vmax.f32 %v1119_v54, 0.0 }
 0x71a   : > { %1178 = vst.msk [vmem:[%s386_s27] sm:$0xff] %vm962_vm8, %v1176_v55  ;;  %v1175_v58 = vadd.f32 %v1171_v56, %v1121_v57 }
 0x71c   : > { %v1177_v59 = vmax.f32 %v1175_v58, 0.0 }
 0x71e   : > { %1179 = vst.msk [vmem:[%s386_s27 + $0x8] sm:$0xff] %vm962_vm8, %v1177_v59 }
 0x71f PF: > { %s21_s17 = sadd.s32 1, %s1417_s17  }
 0x720   : > { %p18_p4 = scmp.ge.s32.totalorder %s21_s17, 4  }
 0x722   :  { %20 = sbr.rel (!%p18_p4) target bundleno = 1 (0x1), region = 98 }

</bundles_post_ra>
